<compile_context>
chip_gen: v6e
topology: v6e:2x2x1
jax: 0.10.0
libtpu: 0.0.40
codegen_flags: <defaults>
</compile_context>

<pallas_src>
import functools
import math

import jax
import jax.numpy as jnp
from jax.experimental import pallas as pl
from jax.experimental.pallas import tpu as pltpu


def _round_up(v, m):
    return (v + m - 1) // m * m


# ---------------------------------------------------------------------------
# Kernels
# ---------------------------------------------------------------------------
def _taps_matmul_kernel(x_ref, w_ref, o_ref, *, seq_len):
    """In-kernel circular taps. x_ref: (tile_n, c_in), tile_n % seq_len == 0."""
    xt = x_ref[...]
    # Tiles start at sequence boundaries, so (row % seq_len) is the position
    # within the row's sequence. Taps never cross sequences.
    r = jax.lax.broadcasted_iota(jnp.int32, xt.shape, 0)
    first = (r % seq_len) == 0
    last = (r % seq_len) == (seq_len - 1)
    xm = jnp.where(first, jnp.roll(xt, 1 - seq_len, axis=0),
                   jnp.roll(xt, 1, axis=0))            # x[t-1], circular per-seq
    xp = jnp.where(last, jnp.roll(xt, seq_len - 1, axis=0),
                   jnp.roll(xt, -1, axis=0))           # x[t+1], circular per-seq
    acc = jnp.dot(xm, w_ref[0], preferred_element_type=jnp.float32)
    acc = acc + jnp.dot(xt, w_ref[1], preferred_element_type=jnp.float32)
    acc = acc + jnp.dot(xp, w_ref[2], preferred_element_type=jnp.float32)
    o_ref[...] = acc.astype(o_ref.dtype)


def _fused_matmul_kernel(x_ref, w_ref, o_ref):
    """Fallback: taps prebuilt in the wrapper; single fused MXU matmul."""
    o_ref[...] = jnp.dot(
        x_ref[...], w_ref[...], preferred_element_type=jnp.float32
    ).astype(o_ref.dtype)


# ---------------------------------------------------------------------------
# Wrapper
# ---------------------------------------------------------------------------
def token_embedding(x, conv_w, *, compute_dtype=None, out_dtype=None,
                    max_tile_rows=4096, force_fallback=False):
    """TokenEmbedding forward (circular Conv1d, kernel=3, padding=1, no bias).

    x:      (B, L, c_in)        channels-last (PyTorch permutes to NCL internally)
    conv_w: (d_model, c_in, 3)  PyTorch Conv1d weight layout
    returns (B, L, d_model) in out_dtype (default: x.dtype)
    """
    B, L, c_in = x.shape
    d_model = conv_w.shape[0]
    N = B * L

    in_dtype = jnp.dtype(compute_dtype) if compute_dtype is not None else jnp.dtype(x.dtype)
    out_dtype = jnp.dtype(out_dtype) if out_dtype is not None else jnp.dtype(x.dtype)
    in_b = in_dtype.itemsize
    out_b = out_dtype.itemsize

    # Stacked per-tap weights: w_stack[k] = conv_w[:, :, k].T  -> (3, c_in, d_model)
    w_stack = jnp.transpose(conv_w, (2, 1, 0)).astype(in_dtype)
    x2d = x.reshape(N, c_in).astype(in_dtype)          # contiguous flatten: free

    # ---- generation-aware VMEM budget --------------------------------------
    try:
        vmem_cap = int(pltpu.get_tpu_info().vmem_capacity_bytes)
    except Exception:
        vmem_cap = 64 * 1024 * 1024                    # conservative (v7x per-TC)
    w_buf_bytes = 2 * 3 * c_in * d_model * in_b        # resident weight block (x2 buffers)
    headroom = 2 * 1024 * 1024                          # Mosaic internal scratch
    budget = max(int(0.40 * vmem_cap) - w_buf_bytes - headroom, 4 * 1024 * 1024)
    vmem_limit = int(min(vmem_cap - headroom,
                         2 * budget + w_buf_bytes + 8 * 1024 * 1024))
    vmem_limit = max(vmem_limit, 32 * 1024 * 1024)

    # dtype-native sublane multiple (f32: 8, bf16: 16, int8/fp8: 32)
    sub = {4: 8, 2: 16, 1: 32}.get(in_b, 8)

    # Smallest legal row tile for in-kernel taps: whole sequences, sublane aligned.
    base = L * sub // math.gcd(L, sub)                  # lcm(L, sub)
    if base >= N:
        base = N                                        # single full-array block

    def pick_tile(row_bytes, align):
        """Largest multiple of `align` whose double-buffered in+out tiles fit."""
        rows = min(budget // (2 * row_bytes), max_tile_rows)
        rows = max(align, rows // align * align)
        if N > align:
            rows = min(rows, (N // align) * align)
            if rows >= N:                               # split so grid >= 2 steps
                rows = max(align, _round_up(pl.cdiv(N, 2), align))
        else:
            rows = align
        return rows

    compiler_params = pltpu.CompilerParams(
        dimension_semantics=("parallel",),
        vmem_limit_bytes=vmem_limit,
    )

    row_a = c_in * in_b + d_model * out_b
    use_in_kernel_taps = (not force_fallback) and (2 * base * row_a <= budget)

    if use_in_kernel_taps:
        # ---- preferred path: taps built inside the kernel, x read once -----
        tile_n = pick_tile(row_a, base)
        grid = (pl.cdiv(N, tile_n),)
        out = pl.pallas_call(
            functools.partial(_taps_matmul_kernel, seq_len=L),
            out_shape=jax.ShapeDtypeStruct((N, d_model), out_dtype),
            grid_spec=pltpu.PrefetchScalarGridSpec(
                num_scalar_prefetch=0,
                grid=grid,
                in_specs=[
                    pl.BlockSpec((tile_n, c_in), lambda i: (i, 0)),
                    pl.BlockSpec((3, c_in, d_model), lambda i: (0, 0, 0)),
                ],
                out_specs=pl.BlockSpec((tile_n, d_model), lambda i: (i, 0)),
            ),
            compiler_params=compiler_params,
        )(x2d, w_stack)
    else:
        # ---- fallback: one sequence tile would blow VMEM; prebuild taps ----
        # TODO(synk): could stream a single long sequence via a nested
        # emit_pipeline instead of materializing the 3x-wide LHS in HBM.
        xm = jnp.roll(x, 1, axis=1).astype(in_dtype)
        xp = jnp.roll(x, -1, axis=1).astype(in_dtype)
        xcat = jnp.concatenate([xm, x.astype(in_dtype), xp],
                               axis=-1).reshape(N, 3 * c_in)
        wcat = w_stack.reshape(3 * c_in, d_model)
        row_b = 3 * c_in * in_b + d_model * out_b
        tile_n = pick_tile(row_b, sub)
        grid = (pl.cdiv(N, tile_n),)
        out = pl.pallas_call(
            _fused_matmul_kernel,
            out_shape=jax.ShapeDtypeStruct((N, d_model), out_dtype),
            grid_spec=pltpu.PrefetchScalarGridSpec(
                num_scalar_prefetch=0,
                grid=grid,
                in_specs=[
                    pl.BlockSpec((tile_n, 3 * c_in), lambda i: (i, 0)),
                    pl.BlockSpec((3 * c_in, d_model), lambda i: (0, 0)),
                ],
                out_specs=pl.BlockSpec((tile_n, d_model), lambda i: (i, 0)),
            ),
            compiler_params=compiler_params,
        )(xcat, wcat)

    return out.reshape(B, L, d_model)


def reference(x, conv_w):
    """Pure-JAX reference mirroring the PyTorch forward (circular conv, k=3)."""
    xp = jnp.roll(x, 1, axis=1)    # x[t-1] (circular)
    xn = jnp.roll(x, -1, axis=1)   # x[t+1] (circular)
    return xp @ conv_w[:, :, 0].T + x @ conv_w[:, :, 1].T + xn @ conv_w[:, :, 2].T


if __name__ == "__main__":
    B, L, c_in, d_model = 2, 16, 4, 32

    key = jax.random.PRNGKey(0)
    kx, kw = jax.random.split(key)

    x = jax.random.normal(kx, (B, L, c_in), dtype=jnp.float32)

    # Conv1d weight, kaiming_normal_(fan_in, leaky_relu): std ~= sqrt(2 / (c_in*3))
    fan_in = c_in * 3
    std = math.sqrt(2.0 / fan_in)
    conv_w = std * jax.random.normal(kw, (d_model, c_in, 3), dtype=jnp.float32)

    ref = reference(x, conv_w)

    # f32, preferred in-kernel-taps path
    out = jax.block_until_ready(token_embedding(x, conv_w))
    assert out.shape == (B, L, d_model) and out.dtype == x.dtype
    assert jnp.allclose(out, ref, atol=1e-4, rtol=1e-4), "f32 taps-path mismatch"

    # f32, fallback fused-matmul path (wrapper-built taps) -- kept correct too
    out_fb = jax.block_until_ready(token_embedding(x, conv_w, force_fallback=True))
    assert jnp.allclose(out_fb, ref, atol=1e-4, rtol=1e-4), "fallback-path mismatch"

    # bf16 operands + bf16 output (MXU-native, f32 accumulation, half store traffic)
    out_bf16 = jax.block_until_ready(
        token_embedding(x, conv_w, compute_dtype=jnp.bfloat16, out_dtype=jnp.bfloat16))
    assert out_bf16.shape == (B, L, d_model) and out_bf16.dtype == jnp.bfloat16
    assert jnp.allclose(out_bf16.astype(jnp.float32), ref, atol=1e-1, rtol=1e-1), \
        "bf16 mismatch vs JAX reference"

    print("KERNEL_OK")
</pallas_src>

<mosaic_0001>
module attributes {stable_mosaic.version = 11 : i64} {
  func.func @_taps_matmul_kernel(%arg0: i32, %arg1: memref<16x4xf32, #tpu.memory_space<vmem>>, %arg2: memref<3x4x32xf32, #tpu.memory_space<vmem>>, %arg3: memref<16x32xf32, #tpu.memory_space<vmem>>) attributes {dimension_semantics = [#tpu.dimension_semantics<parallel>], iteration_bounds = array<i64: 2>, scalar_prefetch = 0 : i64, scratch_operands = 0 : i64, tpu.core_type = #tpu.core_type<tc>, window_params = [{transform_indices = @transform_0, window_bounds = array<i64: 16, 4>}, {pipeline_mode = #tpu.pipeline_mode<synchronous>, transform_indices = @transform_1, window_bounds = array<i64: 3, 4, 32>}, {transform_indices = @transform_2, window_bounds = array<i64: 16, 32>}]} {
    %c0 = arith.constant 0 : index
    %c0_0 = arith.constant 0 : index
    %0 = vector.load %arg1[%c0, %c0_0] : memref<16x4xf32, #tpu.memory_space<vmem>>, vector<16x4xf32>
    %1 = tpu.iota {dimensions = array<i32: 0>} : vector<16x4xi32>
    %c16_i32 = arith.constant 16 : i32
    %c0_i32 = arith.constant 0 : i32
    %2 = arith.cmpi eq, %c16_i32, %c0_i32 : i32
    %c1_i32 = arith.constant 1 : i32
    %3 = arith.select %2, %c1_i32, %c16_i32 : i32
    %4 = vector.broadcast %3 : i32 to vector<16x4xi32>
    %5 = arith.remsi %1, %4 : vector<16x4xi32>
    %c0_i32_1 = arith.constant 0 : i32
    %6 = vector.broadcast %c0_i32_1 : i32 to vector<16x4xi32>
    %7 = arith.cmpi ne, %5, %6 : vector<16x4xi32>
    %c0_i32_2 = arith.constant 0 : i32
    %8 = vector.broadcast %c0_i32_2 : i32 to vector<16x4xi32>
    %9 = arith.cmpi slt, %5, %8 : vector<16x4xi32>
    %c0_i32_3 = arith.constant 0 : i32
    %10 = arith.cmpi slt, %3, %c0_i32_3 : i32
    %11 = vector.broadcast %10 : i1 to vector<16x4xi1>
    %12 = vector.broadcast %11 : vector<16x4xi1> to vector<16x4xi1>
    %13 = arith.xori %9, %12 : vector<16x4xi1>
    %14 = arith.andi %13, %7 : vector<16x4xi1>
    %15 = vector.broadcast %3 : i32 to vector<16x4xi32>
    %16 = arith.addi %5, %15 : vector<16x4xi32>
    %17 = arith.select %14, %16, %5 : vector<16x4xi1>, vector<16x4xi32>
    %c0_i32_4 = arith.constant 0 : i32
    %18 = vector.broadcast %c0_i32_4 : i32 to vector<16x4xi32>
    %19 = arith.cmpi eq, %17, %18 : vector<16x4xi32>
    %c16_i32_5 = arith.constant 16 : i32
    %c0_i32_6 = arith.constant 0 : i32
    %20 = arith.cmpi eq, %c16_i32_5, %c0_i32_6 : i32
    %c1_i32_7 = arith.constant 1 : i32
    %21 = arith.select %20, %c1_i32_7, %c16_i32_5 : i32
    %22 = vector.broadcast %21 : i32 to vector<16x4xi32>
    %23 = arith.remsi %1, %22 : vector<16x4xi32>
    %c0_i32_8 = arith.constant 0 : i32
    %24 = vector.broadcast %c0_i32_8 : i32 to vector<16x4xi32>
    %25 = arith.cmpi ne, %23, %24 : vector<16x4xi32>
    %c0_i32_9 = arith.constant 0 : i32
    %26 = vector.broadcast %c0_i32_9 : i32 to vector<16x4xi32>
    %27 = arith.cmpi slt, %23, %26 : vector<16x4xi32>
    %c0_i32_10 = arith.constant 0 : i32
    %28 = arith.cmpi slt, %21, %c0_i32_10 : i32
    %29 = vector.broadcast %28 : i1 to vector<16x4xi1>
    %30 = vector.broadcast %29 : vector<16x4xi1> to vector<16x4xi1>
    %31 = arith.xori %27, %30 : vector<16x4xi1>
    %32 = arith.andi %31, %25 : vector<16x4xi1>
    %33 = vector.broadcast %21 : i32 to vector<16x4xi32>
    %34 = arith.addi %23, %33 : vector<16x4xi32>
    %35 = arith.select %32, %34, %23 : vector<16x4xi1>, vector<16x4xi32>
    %c15_i32 = arith.constant 15 : i32
    %36 = vector.broadcast %c15_i32 : i32 to vector<16x4xi32>
    %37 = arith.cmpi eq, %35, %36 : vector<16x4xi32>
    %38 = vector.extract_strided_slice %0 {offsets = [15, 0], sizes = [1, 4], strides = [1, 1]} : vector<16x4xf32> to vector<1x4xf32>
    %39 = vector.extract_strided_slice %0 {offsets = [0, 0], sizes = [15, 4], strides = [1, 1]} : vector<16x4xf32> to vector<15x4xf32>
    %40 = tpu.concatenate %38, %39 in 0 : vector<1x4xf32>, vector<15x4xf32> -> vector<16x4xf32>
    %41 = vector.extract_strided_slice %0 {offsets = [15, 0], sizes = [1, 4], strides = [1, 1]} : vector<16x4xf32> to vector<1x4xf32>
    %42 = vector.extract_strided_slice %0 {offsets = [0, 0], sizes = [15, 4], strides = [1, 1]} : vector<16x4xf32> to vector<15x4xf32>
    %43 = tpu.concatenate %41, %42 in 0 : vector<1x4xf32>, vector<15x4xf32> -> vector<16x4xf32>
    %44 = arith.select %19, %40, %43 : vector<16x4xi1>, vector<16x4xf32>
    %45 = vector.extract_strided_slice %0 {offsets = [1, 0], sizes = [15, 4], strides = [1, 1]} : vector<16x4xf32> to vector<15x4xf32>
    %46 = vector.extract_strided_slice %0 {offsets = [0, 0], sizes = [1, 4], strides = [1, 1]} : vector<16x4xf32> to vector<1x4xf32>
    %47 = tpu.concatenate %45, %46 in 0 : vector<15x4xf32>, vector<1x4xf32> -> vector<16x4xf32>
    %48 = vector.extract_strided_slice %0 {offsets = [1, 0], sizes = [15, 4], strides = [1, 1]} : vector<16x4xf32> to vector<15x4xf32>
    %49 = vector.extract_strided_slice %0 {offsets = [0, 0], sizes = [1, 4], strides = [1, 1]} : vector<16x4xf32> to vector<1x4xf32>
    %50 = tpu.concatenate %48, %49 in 0 : vector<15x4xf32>, vector<1x4xf32> -> vector<16x4xf32>
    %51 = arith.select %37, %47, %50 : vector<16x4xi1>, vector<16x4xf32>
    %c0_11 = arith.constant 0 : index
    %c0_12 = arith.constant 0 : index
    %c0_13 = arith.constant 0 : index
    %52 = vector.load %arg2[%c0_11, %c0_12, %c0_13] : memref<3x4x32xf32, #tpu.memory_space<vmem>>, vector<1x4x32xf32>
    %53 = vector.shape_cast %52 : vector<1x4x32xf32> to vector<4x32xf32>
    %cst = arith.constant dense<0.000000e+00> : vector<16x32xf32>
    %54 = tpu.matmul %44, %53, %cst {dimension_numbers = #tpu.dot_dimension_numbers<[1], [0], [0], [1], [0, 0, 1, 1], [], []>} : vector<16x4xf32>, vector<4x32xf32>, vector<16x32xf32> -> vector<16x32xf32>
    %c1 = arith.constant 1 : index
    %c0_14 = arith.constant 0 : index
    %c0_15 = arith.constant 0 : index
    %55 = vector.load %arg2[%c1, %c0_14, %c0_15] : memref<3x4x32xf32, #tpu.memory_space<vmem>>, vector<1x4x32xf32>
    %56 = vector.shape_cast %55 : vector<1x4x32xf32> to vector<4x32xf32>
    %cst_16 = arith.constant dense<0.000000e+00> : vector<16x32xf32>
    %57 = tpu.matmul %0, %56, %cst_16 {dimension_numbers = #tpu.dot_dimension_numbers<[1], [0], [0], [1], [0, 0, 1, 1], [], []>} : vector<16x4xf32>, vector<4x32xf32>, vector<16x32xf32> -> vector<16x32xf32>
    %58 = arith.addf %54, %57 : vector<16x32xf32>
    %c2 = arith.constant 2 : index
    %c0_17 = arith.constant 0 : index
    %c0_18 = arith.constant 0 : index
    %59 = vector.load %arg2[%c2, %c0_17, %c0_18] : memref<3x4x32xf32, #tpu.memory_space<vmem>>, vector<1x4x32xf32>
    %60 = vector.shape_cast %59 : vector<1x4x32xf32> to vector<4x32xf32>
    %cst_19 = arith.constant dense<0.000000e+00> : vector<16x32xf32>
    %61 = tpu.matmul %51, %60, %cst_19 {dimension_numbers = #tpu.dot_dimension_numbers<[1], [0], [0], [1], [0, 0, 1, 1], [], []>} : vector<16x4xf32>, vector<4x32xf32>, vector<16x32xf32> -> vector<16x32xf32>
    %62 = arith.addf %58, %61 : vector<16x32xf32>
    %c0_20 = arith.constant 0 : index
    %c0_21 = arith.constant 0 : index
    %63 = vector.load %arg3[%c0_20, %c0_21] : memref<16x32xf32, #tpu.memory_space<vmem>>, vector<16x32xf32>
    tpu.vector_store %arg3[%c0_20, %c0_21], %62 {strides = array<i32>} : memref<16x32xf32, #tpu.memory_space<vmem>>, vector<16x32xf32>,
    return
  }
  func.func @transform_0(%arg0: i32) -> (i32, i32) {
    %c0_i32 = arith.constant 0 : i32
    %c0_i32_0 = arith.constant 0 : i32
    return %arg0, %c0_i32 : i32, i32
  }
  func.func @transform_1(%arg0: i32) -> (i32, i32, i32) {
    %c0_i32 = arith.constant 0 : i32
    %c0_i32_0 = arith.constant 0 : i32
    %c0_i32_1 = arith.constant 0 : i32
    %c0_i32_2 = arith.constant 0 : i32
    return %c0_i32, %c0_i32_0, %c0_i32_1 : i32, i32, i32
  }
  func.func @transform_2(%arg0: i32) -> (i32, i32) {
    %c0_i32 = arith.constant 0 : i32
    %c0_i32_0 = arith.constant 0 : i32
    return %arg0, %c0_i32 : i32, i32
  }
}

</mosaic_0001>

<bundles_post_ra>
// kernel: tpu_custom_call.1
= control target key start
LH: loop header
LB: loop body
LE: loop exit
PB: predicated region body
PF: predicated region fallthrough
CT: control target
= control target key end

     0   :  { %7 = vsyncpa [#allocation3], 0  ;;  %s790_s0 = inlined_call_operand.vmem [shape: f32[32,4], index: 0, kind: input, shape index: {}]   ;;  %s791_s1 = inlined_call_operand.vmem [shape: f32[3,4,32], index: 1, kind: input, shape index: {}]   ;;  %s792_s2 = inlined_call_operand.hbm [shape: f32[32,32], index: 2, kind: output, shape index: {}]  }
   0x1   :  { %9 = vsyncpa [#allocation3 + $0x1], 0  ;;  %s668_s9 = smov 0   ;;  %s670_s10 = smov 0  }
   0x2   :  { %s672_s11 = smov 0   ;;  %s674_s12 = smov 0  }
   0x3 LB: > { %s689_s13 = sadd.s32 4294967295, %s648_s12   ;;  %s499_s14 = sadd.s32 4294967294, %s648_s12   ;;  %s648_s12 = sphi %s674_s12, %s798_s12   ;;  %s644_s11 = sphi %s672_s11, %s797_s11   ;;  %s640_s10 = sphi %s670_s10, %s796_s10   ;;  %s636_s9 = sphi %s668_s9, %s795_s9  }
   0x4   : > { %s693_s15 = sadd.s32 1, %s648_s12   ;;  %s69_s16 = sadd.s32 1, %s644_s11 }
   0x5   : > { %s66_s17 = ssub.s32 %s648_s12, %s693_s15  ;;  %p79_p0 = scmp.ne.s32.totalorder %s644_s11, %s640_s10 }
   0x6   : > { %p67_p1 = scmp.eq.s32.totalorder %s66_s17, 0  ;;  %p80_p2 = scmp.eq.s32.totalorder %s689_s13, 1 }
   0x7   : > { %p85_p3 = scmp.ne.s32.totalorder %s640_s10, %s636_s9  ;;  %p86_p4 = scmp.eq.s32.totalorder %s499_s14, 1 }
   0x8   : > { %s704_s18 = scalar_select %p67_p1, %s644_s11, %s69_s16  }
   0x9   : > { %p706_p5 = por %p80_p2, %p79_p0  ;;  %p710_p6 = por %p86_p4, %p85_p3 }
   0xa   : > { %p502_p7 = scmp.ge.s32.totalorder %s648_s12, 1  ;;  %p116_p8 = scmp.lt.s32.totalorder %s648_s12, 3 }
   0xc   : > { %p117_p9 = pnand %p502_p7, %p116_p8 }
   0xd   : > { %s504_s23 = sshll.u32 (!%p117_p9), %s689_s13, 1  ;;  %s135_s4 = sand.u32 (!%p117_p9), 1, %s640_s10  }
   0xe   : > { %120 = sbr.rel (%p117_p9) target bundleno = 240 (0xf0), region = 28  ;;  %p139_p10 = scmp.lt.s32.totalorder (!%p117_p9), %s504_s23, 3 }
   0xf   : > { %s503_s5 = sshll.u32 (!%p117_p9), %s135_s4, 4  ;;  %s522_s8 = sshll.u32 (!%p117_p9), %s689_s13, 8 }
  0x10   : > { %s137_s6 = scalar_lea.vmem (!%p117_p9), [#allocation2], %s503_s5  ;;  %s748_s17 = scalar_lea.hbm (!%p117_p9), %s792_s2, %s522_s8 }
  0x11   : > { %s437_s7 = sshll.u32 (!%p117_p9), %s137_s6, 4  ;;  %s750_s21 = scalar_lea.sflag (!%p117_p9), [#allocation3], %s135_s4  ;;  %s743_s7 = int_to_ptr.vmem [resolvable:$true] %s437_s7 }
  0x12   : > { %s588_s13 = scalar_lea.vmem (!%p117_p9), %s743_s7, 256  ;;  %s650_s22 = smov (!%p117_p9), [#allocation2]  }
  0x13   : > { %v506_v0 = vld [vmem:[%s791_s1 + $0x4] sm:$0xf]  ;;  %vm171_vm0 = vcmask 1043456   ;;  %v513_v1 = vld [vmem:[%s791_s1 + $0x8] sm:$0xf]  ;;  %s800_s23 = smov (!%p139_p10, %s504_s23), 3  ;;  %p589_p11 = scmp.ne.s32.totalorder %s743_s7, %s588_s13 }
  0x14   : > { %532 = vmatprep.subr.msk.mxu0 %vm171_vm0, %v506_v0  ;;  %v163_v2 = vld [vmem:[%s791_s1] sm:$0xf]  ;;  %s505_s28 = sshll.u32 %s800_s23, 3  ;;  %vm166_vm1 = vcmask 31744   ;;  %vm151_vm2 = vcmask 1040384   ;;  %vm156_vm3 = vcmask 1046528  }
  0x15   : > { %533 = vmatpush3.msk.msra.mxu0 %vm171_vm0, %v506_v0  ;;  %537 = vmatprep.subr.msk.mxu1 %vm171_vm0, %v163_v2  ;;  %s142_s3 = scalar_lea.vmem %s790_s0, %s505_s28  ;;  %vm420_vm4 = vcmask 261120   ;;  %p590_p12 = pnand %p589_p11, %p706_p5 }
  0x16   : > { %542 = vmatprep.subr.msk.mxu0 %vm171_vm0, %v513_v1  ;;  %538 = vmatpush3.msk.msra.mxu1 %vm171_vm0, %v163_v2  ;;  %v145_v3 = vld [vmem:[%s142_s3] sm:$0xff]  ;;  %v146_v4 = vld [vmem:[%s142_s3 + $0x8] sm:$0xff]  ;;  %s592_s23 = sshll.u32 %s650_s22, 4  ;;  %s593_s23 = int_to_ptr.vmem [resolvable:$false] %s592_s23 }
  0x17   : > { %v152_v5 = vrot.slane %v145_v3, 7  ;;  %v157_v6 = vrot.slane %v145_v3, 1  ;;  %534 = vmatprep.mubr.msk.f32.mxu0 %vm166_vm1, %v145_v3  ;;  %v158_v7 = vrot.slane %v146_v4, 1  ;;  %v148_v8 = vrot.slane %v146_v4, 7  ;;  %p591_p13 = pneg %p590_p12  ;;  %s594_s24 = scalar_lea.vmem %s593_s23, 512 }
  0x18   : > { %535 = vmatmul.mubr.msk.f32.vlgmr.msra.gmra.mxu0 %vm166_vm1, %v146_v4  ;;  %p595_p0 = scmp.lt.s32.totalorder %s743_s7, %s593_s23  ;;  %p596_p1 = scmp.lt.s32.totalorder %s594_s24, %s588_s13 }
  0x19   : > { %543 = vmatpush3.msk.msra.mxu0 %vm171_vm0, %v513_v1  ;;  %v155_v9 = vsel %vm151_vm2, %v148_v8, %v152_v5  ;;  %v153_v10 = vsel %vm151_vm2, %v152_v5, %v148_v8  ;;  %v159_v11 = vsel %vm156_vm3, %v157_v6, %v158_v7  ;;  %v162_v12 = vsel %vm156_vm3, %v158_v7, %v157_v6 }
  0x1a   : > { %539 = vmatprep.mubr.msk.f32.mxu1 %vm166_vm1, %v155_v9  ;;  %544 = vmatprep.mubr.msk.f32.mxu0 %vm166_vm1, %v159_v11  ;;  %p597_p2 = por %p596_p1, %p595_p0 }
  0x1b   : > { %540 = vmatmul.mubr.msk.f32.vlgmr.msra.gmra.mxu1 %vm166_vm1, %v153_v10 }
  0x1c   : > { %545 = vmatmul.mubr.msk.f32.vlgmr.msra.gmra.mxu0 %vm166_vm1, %v162_v12  ;;  %p598_p3 = pnand %p597_p2, %p591_p13 }
  0xd8   : > { %v536_v13 = vpop.f32.mrf.mxu0 }
  0xda   : > { %v241_v14 = vpop.f32.mrf.mxu0 }
  0xdb   : > { %v541_v15 = vpop.f32.mrf.mxu1 }
  0xdc   : > { %v330_v16 = vadd.f32 %v541_v15, %v536_v13  ;;  %v546_v17 = vpop.f32.mrf.mxu0 }
  0xdd   : > { %v324_v18 = vpop.f32.mrf.mxu1 }
  0xde   : > { %v419_v19 = vadd.f32 %v546_v17, %v330_v16  ;;  %v325_v20 = vadd.f32 %v324_v18, %v241_v14  ;;  %v409_v21 = vpop.f32.mrf.mxu0 }
  0xe0   : > { %422 = vst.msk [vmem:[%s137_s6 + $0x8] sm:$0xff] %vm420_vm4, %v419_v19  ;;  %v418_v22 = vadd.f32 %v409_v21, %v325_v20 }
  0xe2   : > { %421 = vst.msk [vmem:[%s137_s6] sm:$0xff] %vm420_vm4, %v418_v22 }
  0xe3   : > { %601 = shalt.err (!%p598_p3)
}
  0xe4   : > { %s602_s25 = scalar_lea.hbm %s748_s17, 256  ;;  %s606_s28 = scalar_lea.hbm %s792_s2, 512 }
  0xe5   : > { %p603_p4 = scmp.ne.s32.totalorder %s748_s17, %s602_s25  ;;  %p607_p9 = scmp.lt.s32.totalorder %s748_s17, %s792_s2 }
  0xe6   : > { %p608_p10 = scmp.lt.s32.totalorder %s606_s28, %s602_s25 }
  0xe7   : > { %p604_p7 = pnand %p603_p4, %p706_p5 }
  0xe8   : > { %p609_p11 = por %p608_p10, %p607_p9 }
  0xe9   : > { %p605_p8 = pneg %p604_p7 }
  0xeb   : > { %p610_p12 = pnand %p609_p11, %p605_p8 }
  0xed   : > { %613 = shalt.err (!%p610_p12)
}
  0xee   : > { %s651_s3 = smov 128   ;;  %s652_s4 = smov 8  }
  0xef   : > { %547 = dma.vmem_to_hbm [thread:$0]  (%p706_p5), %s743_s7, 256, %s748_s17, %s750_s21, %s651_s3, %s651_s3, %s652_s4  }
  0xf0 PF: > { %p553_p13 = scmp.ge.s32.totalorder %s648_s12, 2  ;;  %s452_s5 = sand.u32 1, %s636_s9  }
  0xf1   : > { %s453_s6 = scalar_lea.sflag [#allocation3], %s452_s5 }
  0xf2   : > { %p550_p0 = pnand %p553_p13, %p710_p6 }
  0xf4   : > { %p551_p1 = pneg %p550_p0 }
  0xf6   : > { %631 = dma.done.wait (%p551_p1), %s453_s6, 256  }
  0xf7   : > { %633 = vsyncadd (%p551_p1), %s453_s6, 4294967040  ;;  %p12_p2 = scmp.ge.s32.totalorder %s693_s15, 4   ;;  %s795_s9 = smov %s640_s10 }
  0xf8   : > { %s796_s10 = smov %s644_s11  ;;  %s797_s11 = smov %s704_s18 }
  0xf9   : > { %s798_s12 = smov %s693_s15  ;;  %14 = sbr.rel (!%p12_p2) target bundleno = 3 (0x3), region = 65 }
  0xfe   :  { %458 = vsyncpa [#allocation3], 1 }
  0xff   :  { %460 = vsyncpa [#allocation3 + $0x1], 1 }

</bundles_post_ra>
